<compile_context>
chip_gen: v6e
topology: v6e:2x2x1
jax: 0.10.0
libtpu: 0.0.40
codegen_flags: <defaults>
</compile_context>

<pallas_src>
import functools

import jax
import jax.numpy as jnp
from jax import lax
from jax.experimental import pallas as pl
from jax.experimental.pallas import tpu as pltpu

LN_EPS = 1e-5
_LANE = 128


def _round_up(x, m):
    return (x + m - 1) // m * m


# ---------------------------------------------------------------------------
# Shared epilogue: fused LayerNorm (single-pass stats) + <wo*gamma, y_hat> + c
# ---------------------------------------------------------------------------
def _layernorm_project(y, wg, c, d_true):
    # Padded lanes of y are exactly zero (V / bias segments are zero-padded),
    # so sums over the padded width Dp equal sums over the true width D;
    # padded lanes of wg are zero, masking y_hat in the final contraction.
    inv_d = 1.0 / d_true
    sum_y = jnp.sum(y, axis=-1, keepdims=True)
    sum_y2 = jnp.sum(y * y, axis=-1, keepdims=True)
    mu = sum_y * inv_d
    var = sum_y2 * inv_d - mu * mu          # one pass: E[y^2] - mu^2
    y_hat = (y - mu) * lax.rsqrt(var + LN_EPS)
    return jnp.sum(wg * y_hat, axis=-1) + c


# ---------------------------------------------------------------------------
# Single-shot kernel: whole [S, S] score block per grid step
# ---------------------------------------------------------------------------
def _input_masker_kernel(x_ref, wqkv_ref, bqkv_ref, wg_ref, c_ref, out_ref, *,
                         d_true):
    Bt, S, D = x_ref.shape
    Dp = wg_ref.shape[1]                    # 128-lane padded feature width
    cdt = x_ref.dtype                       # compute dtype (bf16 by default)

    # Fused Q/K/V projection: [Bt*S, D] @ [D, 3*Dp], f32 MXU accumulation.
    # TODO(synk): when S is not a multiple of the sublane tile this reshape is
    # a relayout copy; pad S wrapper-side (with key masking) if it matters.
    x2 = x_ref[...].reshape(Bt * S, D)
    qkv = jnp.dot(x2, wqkv_ref[...], preferred_element_type=jnp.float32)
    qkv = qkv + bqkv_ref[...]

    # Dp is a multiple of 128, so these lane slices are tile-aligned (no copy).
    q = qkv[:, :Dp].reshape(Bt, S, Dp).astype(cdt)       # pre-scaled by 1/scale
    k = qkv[:, Dp:2 * Dp].reshape(Bt, S, Dp).astype(cdt)
    v = qkv[:, 2 * Dp:].reshape(Bt, S, Dp).astype(cdt)

    # Scores: contract the feature axis of both operands (no K^T copy).
    # TODO(synk): attention_masks / output_attention paths are not implemented.
    att = jnp.einsum("bqd,bkd->bqk", q, k, preferred_element_type=jnp.float32)

    # Softmax over keys; normalization deferred to y (fewer multiplies; the
    # approx-reciprocal per-row scale error cancels through LayerNorm up to
    # the +eps term).
    # TODO(synk): if the EUP slot binds on v6e/v7x, compute exp in bf16
    # (keep row-sum / PV in f32); do NOT do this on v5e.
    m = jnp.max(att, axis=-1, keepdims=True)
    p = jnp.exp(att - m)
    l = jnp.sum(p, axis=-1, keepdims=True)
    y = jnp.einsum("bqk,bkd->bqd", p.astype(cdt), v,
                   preferred_element_type=jnp.float32)
    y = y * pl.reciprocal(l, approx=True)

    out = _layernorm_project(y, wg_ref[...], c_ref[0], d_true)       # (Bt, S)
    # Lane-dense store. (Sublane-dense (8, Bt*S//8) only if vst.msk shows up
    # on the critical path -- output bytes are tiny.)
    out_ref[0, 0, :] = out.reshape(Bt * S).astype(out_ref.dtype)


# ---------------------------------------------------------------------------
# Flash-style kernel: online softmax over key tiles (trailing grid axis)
# ---------------------------------------------------------------------------
def _input_masker_flash_kernel(x_q_ref, x_kv_ref, wq_ref, bq_ref, wkv_ref,
                               bkv_ref, wg_ref, c_ref, out_ref,
                               q_scr, m_scr, l_scr, acc_scr, *, d_true):
    kv = pl.program_id(1)
    Bt, S, D = x_q_ref.shape
    Tk = x_kv_ref.shape[1]
    Dp = wg_ref.shape[1]
    cdt = x_q_ref.dtype

    @pl.when(kv == 0)
    def _():
        # Project Q once per batch block; init online-softmax state.
        xq = x_q_ref[...].reshape(Bt * S, D)
        q = jnp.dot(xq, wq_ref[...], preferred_element_type=jnp.float32)
        q = q + bq_ref[...]
        q_scr[...] = q.astype(cdt).reshape(Bt, S, Dp)
        m_scr[...] = jnp.full_like(m_scr, -jnp.inf)
        l_scr[...] = jnp.zeros_like(l_scr)
        acc_scr[...] = jnp.zeros_like(acc_scr)

    # K/V projection for this key tile (fused [D, 2*Dp] matmul).
    xkv = x_kv_ref[...].reshape(Bt * Tk, D)
    kvp = jnp.dot(xkv, wkv_ref[...], preferred_element_type=jnp.float32)
    kvp = kvp + bkv_ref[...]
    k = kvp[:, :Dp].reshape(Bt, Tk, Dp).astype(cdt)
    v = kvp[:, Dp:].reshape(Bt, Tk, Dp).astype(cdt)

    s = jnp.einsum("bqd,bkd->bqk", q_scr[...], k,
                   preferred_element_type=jnp.float32)
    m_prev = m_scr[...]
    m_new = jnp.maximum(m_prev, jnp.max(s, axis=-1, keepdims=True))
    alpha = jnp.exp(m_prev - m_new)
    p = jnp.exp(s - m_new)
    l_scr[...] = alpha * l_scr[...] + jnp.sum(p, axis=-1, keepdims=True)
    acc_scr[...] = alpha * acc_scr[...] + jnp.einsum(
        "bqk,bkd->bqd", p.astype(cdt), v, preferred_element_type=jnp.float32)
    m_scr[...] = m_new

    @pl.when(kv == pl.num_programs(1) - 1)
    def _():
        y = acc_scr[...] * pl.reciprocal(l_scr[...], approx=True)
        out = _layernorm_project(y, wg_ref[...], c_ref[0], d_true)
        out_ref[0, 0, :] = out.reshape(Bt * S).astype(out_ref.dtype)


# ---------------------------------------------------------------------------
# VMEM budgeting / block sizing
# ---------------------------------------------------------------------------
def _usable_vmem():
    try:
        info = pltpu.get_tpu_info()
        cap = int(getattr(info, "vmem_capacity_bytes", 0)) or (64 << 20)
    except Exception:
        cap = 64 << 20                       # conservative (v7x-sized) fallback
    # Explicit scoped-VMEM limit (v5e/v6e default is far below physical; v7x
    # physical is only 64 MiB) plus a block-sizing budget with headroom for
    # Mosaic internal scratch and double buffers.
    limit = max(32 << 20, min(int(cap * 0.85), 112 << 20))
    budget = max(24 << 20, min(int(cap * 0.70), 96 << 20))
    return limit, budget


def _single_vmem_need(bt, S, D, Dp, csz):
    rows = bt * S
    need = 2 * rows * D * csz                        # x block (double-buffered)
    need += D * 3 * Dp * csz + 4 * Dp * 4            # weights (single-buffered)
    need += rows * 3 * Dp * 4 + 3 * rows * Dp * csz  # qkv f32 slab + q/k/v
    need += 2 * rows * S * 4 + rows * S * csz        # att, exp(att), p cast
    need += 2 * rows * Dp * 4                        # y, y_hat
    need += 4 * rows * 4                             # out (double-buffered)
    return need


def _flash_vmem_need(bt, S, tk, D, Dp, csz):
    rows, krows = bt * S, bt * tk
    need = 2 * rows * D * csz + 2 * krows * D * csz  # x_q + x_kv blocks
    need += D * 3 * Dp * csz + 4 * Dp * 4            # weights (single-buffered)
    need += rows * Dp * csz + rows * Dp * 4 + 2 * rows * 4   # q, acc, m, l
    need += krows * 2 * Dp * 4 + 2 * krows * Dp * csz        # kv slab + k/v
    need += 2 * rows * tk * 4 + rows * tk * csz      # s, p, p cast
    need += 2 * rows * Dp * 4                        # y, y_hat (finalize)
    need += 4 * rows * 4
    return need


def _pick_block_b(B, S, need_fn, budget, row_target=1024):
    bt = max(1, min(B, pl.cdiv(row_target, S)))      # 512-1024 rows per step
    if B >= 2:                                       # >=2 grid steps: v7x megacore
        bt = min(bt, pl.cdiv(B, 2))
    while bt > 1 and need_fn(bt) > budget:
        bt -= 1
    return bt


def _pick_kv_block(S, need_fn, budget):
    for cand in (1024, 512, 256, 128):               # lane-aligned divisors first
        if cand < S and S % cand == 0 and need_fn(cand) <= budget:
            return cand
    best = 1
    for cand in range(2, min(S, 512) + 1):
        if S % cand == 0 and need_fn(cand) <= budget:
            best = cand
    return best


def _cost_estimate(B, S, D, Dp, csz):
    flops = 2 * B * S * D * 3 * Dp + 4 * B * S * S * Dp
    bytes_accessed = B * S * D * csz + D * 3 * Dp * csz + 4 * Dp * 4 + B * S * 4
    return pl.CostEstimate(flops=int(flops), transcendentals=int(B * S * S),
                           bytes_accessed=int(bytes_accessed))


def _with_fallback(run):
    # Prefer single-buffered constant-weight specs (they never change block
    # index); fall back to default double-buffering if this Pallas version
    # rejects Buffered(1).
    try:
        return run({"pipeline_mode": pl.Buffered(1)})
    except Exception:
        return run({})


# ---------------------------------------------------------------------------
# Wrapper
# ---------------------------------------------------------------------------
def input_masker_forward(x, params, scale=1.0, compute_dtype=jnp.bfloat16,
                         block_b=None, kv_block=None):
    """InputMasker.forward (mask=None path): x [B, S, D] -> [B, S] float32."""
    B, S, D = x.shape
    wq, bq, wk, bk, wv, bv, wo, bo, gamma, beta = params

    csz = jnp.dtype(compute_dtype).itemsize
    Dp = _round_up(D, _LANE)           # pad each Q/K/V segment to 128 lanes
    inv_scale = jnp.float32(1.0 / scale)

    def pad_out(w):                    # zero-pad output-feature axis to Dp
        return jnp.pad(w, ((0, 0), (0, Dp - w.shape[1])))

    # Pre-transpose to [in, out]; fold 1/scale into Q; pad segments to Dp.
    wq_t = pad_out(wq.T * inv_scale)
    wk_t, wv_t = pad_out(wk.T), pad_out(wv.T)
    bq_p = pad_out(bq * inv_scale).astype(jnp.float32)
    bk_p = pad_out(bk).astype(jnp.float32)
    bv_p = pad_out(bv).astype(jnp.float32)

    # Fold layernorm affine + output linear: out = sum(wg * y_hat) + c.
    wg = pad_out((wo * gamma).astype(jnp.float32))                       # [1, Dp]
    c = (jnp.sum(wo * beta) + bo[0, 0]).reshape(1).astype(jnp.float32)   # (1,)

    x = x.astype(compute_dtype)
    vmem_limit, budget = _usable_vmem()

    use_flash = (kv_block is not None
                 or _single_vmem_need(1, S, D, Dp, csz) > budget)

    if not use_flash:
        wqkv = jnp.concatenate([wq_t, wk_t, wv_t], axis=1).astype(compute_dtype)
        bqkv = jnp.concatenate([bq_p, bk_p, bv_p], axis=1)               # [1, 3Dp]

        bt = block_b if block_b is not None else _pick_block_b(
            B, S, lambda b: _single_vmem_need(b, S, D, Dp, csz), budget)
        n_blocks = pl.cdiv(B, bt)
        b_pad = n_blocks * bt
        xp = jnp.pad(x, ((0, b_pad - B), (0, 0), (0, 0))) if b_pad != B else x

        def run(const_kw):
            return pl.pallas_call(
                functools.partial(_input_masker_kernel, d_true=D),
                out_shape=jax.ShapeDtypeStruct((n_blocks, 1, bt * S),
                                               jnp.float32),
                grid=(n_blocks,),
                in_specs=[
                    pl.BlockSpec((bt, S, D), lambda g: (g, 0, 0)),         # x
                    pl.BlockSpec((D, 3 * Dp), lambda g: (0, 0), **const_kw),
                    pl.BlockSpec((1, 3 * Dp), lambda g: (0, 0), **const_kw),
                    pl.BlockSpec((1, Dp), lambda g: (0, 0), **const_kw),
                    pl.BlockSpec(memory_space=pltpu.MemorySpace.SMEM),     # c
                ],
                out_specs=pl.BlockSpec((1, 1, bt * S), lambda g: (g, 0, 0)),
                compiler_params=pltpu.CompilerParams(
                    dimension_semantics=("parallel",),
                    vmem_limit_bytes=vmem_limit),
                cost_estimate=_cost_estimate(b_pad, S, D, Dp, csz),
            )(xp, wqkv, bqkv, wg, c)

        out3 = _with_fallback(run)
        return out3.reshape(b_pad, S)[:B]

    # ---- Flash (KV-tiled) path -------------------------------------------
    wq_c = wq_t.astype(compute_dtype)                                    # [D, Dp]
    wkv_t = jnp.concatenate([wk_t, wv_t], axis=1).astype(compute_dtype)  # [D, 2Dp]
    bkv_p = jnp.concatenate([bk_p, bv_p], axis=1)                        # [1, 2Dp]

    if kv_block is None:
        kv_block = _pick_kv_block(
            S, lambda tk: _flash_vmem_need(1, S, tk, D, Dp, csz), budget)
    if S % kv_block != 0:
        raise ValueError(f"kv_block={kv_block} must divide seq_len={S}")
    n_kv = S // kv_block
    # TODO(synk): for extremely long S the per-block Q/acc scratch also needs
    # query tiling; out of scope here.

    bt = block_b if block_b is not None else _pick_block_b(
        B, S, lambda b: _flash_vmem_need(b, S, kv_block, D, Dp, csz), budget)
    n_blocks = pl.cdiv(B, bt)
    b_pad = n_blocks * bt
    xp = jnp.pad(x, ((0, b_pad - B), (0, 0), (0, 0))) if b_pad != B else x

    def run(const_kw):
        return pl.pallas_call(
            functools.partial(_input_masker_flash_kernel, d_true=D),
            out_shape=jax.ShapeDtypeStruct((n_blocks, 1, bt * S), jnp.float32),
            grid=(n_blocks, n_kv),
            in_specs=[
                pl.BlockSpec((bt, S, D), lambda g, kv: (g, 0, 0)),       # queries
                pl.BlockSpec((bt, kv_block, D), lambda g, kv: (g, kv, 0)),  # keys/vals
                pl.BlockSpec((D, Dp), lambda g, kv: (0, 0), **const_kw),    # Wq
                pl.BlockSpec((1, Dp), lambda g, kv: (0, 0), **const_kw),    # bq
                pl.BlockSpec((D, 2 * Dp), lambda g, kv: (0, 0), **const_kw),  # Wk|Wv
                pl.BlockSpec((1, 2 * Dp), lambda g, kv: (0, 0), **const_kw),  # bk|bv
                pl.BlockSpec((1, Dp), lambda g, kv: (0, 0), **const_kw),    # wo*gamma
                pl.BlockSpec(memory_space=pltpu.MemorySpace.SMEM),          # c
            ],
            out_specs=pl.BlockSpec((1, 1, bt * S), lambda g, kv: (g, 0, 0)),
            scratch_shapes=[
                pltpu.VMEM((bt, S, Dp), compute_dtype),   # Q (projected once)
                pltpu.VMEM((bt, S, 1), jnp.float32),      # running max
                pltpu.VMEM((bt, S, 1), jnp.float32),      # running denom
                pltpu.VMEM((bt, S, Dp), jnp.float32),     # output accumulator
            ],
            compiler_params=pltpu.CompilerParams(
                dimension_semantics=("parallel", "arbitrary"),
                vmem_limit_bytes=vmem_limit),
            cost_estimate=_cost_estimate(b_pad, S, D, Dp, csz),
        )(xp, xp, wq_c, bq_p, wkv_t, bkv_p, wg, c)

    out3 = _with_fallback(run)
    return out3.reshape(b_pad, S)[:B]


# ---------------------------------------------------------------------------
# Parameters / pure-JAX reference
# ---------------------------------------------------------------------------
def init_params(key, D, std=0.03):
    ks = jax.random.split(key, 8)
    wq = std * jax.random.normal(ks[0], (D, D), jnp.float32)
    wk = std * jax.random.normal(ks[1], (D, D), jnp.float32)
    wv = std * jax.random.normal(ks[2], (D, D), jnp.float32)
    wo = std * jax.random.normal(ks[3], (1, D), jnp.float32)
    bound = 1.0 / jnp.sqrt(D)
    bq = jax.random.uniform(ks[4], (1, D), jnp.float32, -bound, bound)
    bk = jax.random.uniform(ks[5], (1, D), jnp.float32, -bound, bound)
    bv = jax.random.uniform(ks[6], (1, D), jnp.float32, -bound, bound)
    bo = jax.random.uniform(ks[7], (1, 1), jnp.float32, -bound, bound)
    gamma = jnp.ones((1, D), jnp.float32)    # nn.LayerNorm default weight
    beta = jnp.zeros((1, D), jnp.float32)    # nn.LayerNorm default bias
    return (wq, bq, wk, bk, wv, bv, wo, bo, gamma, beta)


def reference_forward(x, params, scale=1.0):
    wq, bq, wk, bk, wv, bv, wo, bo, gamma, beta = params
    Q = jnp.einsum("bsd,ed->bse", x, wq) + bq
    K = jnp.einsum("bsd,ed->bse", x, wk) + bk
    V = jnp.einsum("bsd,ed->bse", x, wv) + bv
    att = jnp.einsum("bqd,bkd->bqk", Q, K) / scale
    p = jax.nn.softmax(att, axis=-1)
    y = jnp.einsum("bqk,bkd->bqd", p, V)
    mu = jnp.mean(y, axis=-1, keepdims=True)
    var = jnp.mean((y - mu) ** 2, axis=-1, keepdims=True)
    y_n = (y - mu) / jnp.sqrt(var + LN_EPS) * gamma + beta
    return jnp.sum(wo * y_n, axis=-1) + bo[0, 0]


if __name__ == "__main__":
    key = jax.random.PRNGKey(0)
    kx, kp, kx2, kp2 = jax.random.split(key, 4)

    # --- Small-shape checks (single-shot kernel) ----------------------------
    B, S, D = 2, 8, 32
    x = jax.random.normal(kx, (B, S, D), jnp.float32)
    params = init_params(kp, D)
    ref = reference_forward(x, params, scale=1.0)

    out_f32 = jax.block_until_ready(
        input_masker_forward(x, params, scale=1.0, compute_dtype=jnp.float32))
    assert out_f32.shape == (B, S)
    assert jnp.allclose(out_f32, ref, atol=1e-3, rtol=1e-3), \
        "f32 mismatch vs reference"

    out_bf16 = jax.block_until_ready(input_masker_forward(x, params, scale=1.0))
    assert out_bf16.shape == (B, S)
    assert jnp.allclose(out_bf16, ref, atol=5e-2, rtol=5e-2), \
        "bf16 mismatch vs reference"

    # --- KV-tiled (flash) path: force kv_block to exercise online softmax ---
    B2, S2, D2 = 2, 256, 128
    x2 = jax.random.normal(kx2, (B2, S2, D2), jnp.float32)
    params2 = init_params(kp2, D2)
    scale2 = float(D2) ** 0.5
    ref2 = reference_forward(x2, params2, scale=scale2)

    out_flash = jax.block_until_ready(
        input_masker_forward(x2, params2, scale=scale2,
                             compute_dtype=jnp.float32, kv_block=128))
    assert out_flash.shape == (B2, S2)
    assert jnp.allclose(out_flash, ref2, atol=1e-3, rtol=1e-3), \
        "flash-path mismatch vs reference"

    print("KERNEL_OK")
</pallas_src>

<mosaic_0001>
module attributes {stable_mosaic.version = 11 : i64} {
  func.func @_input_masker_kernel(%arg0: i32, %arg1: memref<1x8x32xf32, #tpu.memory_space<vmem>>, %arg2: memref<32x384xf32, #tpu.memory_space<vmem>>, %arg3: memref<1x384xf32, #tpu.memory_space<vmem>>, %arg4: memref<1x128xf32, #tpu.memory_space<vmem>>, %arg5: memref<1xf32, #tpu.memory_space<smem>>, %arg6: memref<1x1x8xf32, #tpu.memory_space<vmem>>) attributes {dimension_semantics = [#tpu.dimension_semantics<parallel>], iteration_bounds = array<i64: 2>, scalar_prefetch = 0 : i64, scratch_operands = 0 : i64, tpu.core_type = #tpu.core_type<tc>, window_params = [{transform_indices = @transform_0, window_bounds = array<i64: 1, 8, 32>}, {pipeline_mode = #tpu.pipeline_mode<synchronous>, transform_indices = @transform_1, window_bounds = array<i64: 32, 384>}, {pipeline_mode = #tpu.pipeline_mode<synchronous>, transform_indices = @transform_2, window_bounds = array<i64: 1, 384>}, {pipeline_mode = #tpu.pipeline_mode<synchronous>, transform_indices = @transform_3, window_bounds = array<i64: 1, 128>}, {transform_indices = @transform_4, window_bounds = array<i64: 1>}, {transform_indices = @transform_5, window_bounds = array<i64: 1, 1, 8>}]} {
    %c0 = arith.constant 0 : index
    %c0_0 = arith.constant 0 : index
    %c0_1 = arith.constant 0 : index
    %0 = vector.load %arg1[%c0, %c0_0, %c0_1] : memref<1x8x32xf32, #tpu.memory_space<vmem>>, vector<1x8x32xf32>
    %1 = vector.shape_cast %0 : vector<1x8x32xf32> to vector<8x32xf32>
    %c0_2 = arith.constant 0 : index
    %c0_3 = arith.constant 0 : index
    %2 = vector.load %arg2[%c0_2, %c0_3] : memref<32x384xf32, #tpu.memory_space<vmem>>, vector<32x384xf32>
    %cst = arith.constant dense<0.000000e+00> : vector<8x384xf32>
    %3 = tpu.matmul %1, %2, %cst {dimension_numbers = #tpu.dot_dimension_numbers<[1], [0], [0], [1], [0, 0, 1, 1], [], []>} : vector<8x32xf32>, vector<32x384xf32>, vector<8x384xf32> -> vector<8x384xf32>
    %c0_4 = arith.constant 0 : index
    %c0_5 = arith.constant 0 : index
    %4 = vector.load %arg3[%c0_4, %c0_5] : memref<1x384xf32, #tpu.memory_space<vmem>>, vector<1x384xf32>
    %5 = vector.broadcast %4 : vector<1x384xf32> to vector<8x384xf32>
    %6 = arith.addf %3, %5 : vector<8x384xf32>
    %7 = vector.extract_strided_slice %6 {offsets = [0, 0], sizes = [8, 128], strides = [1, 1]} : vector<8x384xf32> to vector<8x128xf32>
    %8 = vector.shape_cast %7 : vector<8x128xf32> to vector<1x8x128xf32>
    %9 = vector.extract_strided_slice %6 {offsets = [0, 128], sizes = [8, 128], strides = [1, 1]} : vector<8x384xf32> to vector<8x128xf32>
    %10 = vector.shape_cast %9 : vector<8x128xf32> to vector<1x8x128xf32>
    %11 = vector.extract_strided_slice %6 {offsets = [0, 256], sizes = [8, 128], strides = [1, 1]} : vector<8x384xf32> to vector<8x128xf32>
    %12 = vector.shape_cast %11 : vector<8x128xf32> to vector<1x8x128xf32>
    "tpu.trace_start"() <{level = 10 : i32, message = "bqd,bkd->bqk"}> : () -> ()
    %cst_6 = arith.constant dense<0.000000e+00> : vector<1x8x8xf32>
    %13 = tpu.matmul %8, %10, %cst_6 {dimension_numbers = #tpu.dot_dimension_numbers<[2], [2], [1], [1], [0, 0, 0, 1, 1, 1], [0], [0]>} : vector<1x8x128xf32>, vector<1x8x128xf32>, vector<1x8x8xf32> -> vector<1x8x8xf32>
    "tpu.trace_stop"() : () -> ()
    %cst_7 = arith.constant dense<0xFF800000> : vector<1x8xf32>
    %14 = vector.multi_reduction <maximumf>, %13, %cst_7 [2] : vector<1x8x8xf32> to vector<1x8xf32>
    %15 = vector.shape_cast %14 : vector<1x8xf32> to vector<1x8x1xf32>
    %16 = vector.broadcast %15 : vector<1x8x1xf32> to vector<1x8x8xf32>
    %17 = arith.subf %13, %16 : vector<1x8x8xf32>
    %18 = math.exp %17 : vector<1x8x8xf32>
    %cst_8 = arith.constant dense<0.000000e+00> : vector<1x8xf32>
    %19 = vector.multi_reduction <add>, %18, %cst_8 [2] : vector<1x8x8xf32> to vector<1x8xf32>
    %20 = vector.shape_cast %19 : vector<1x8xf32> to vector<1x8x1xf32>
    "tpu.trace_start"() <{level = 10 : i32, message = "bqk,bkd->bqd"}> : () -> ()
    %cst_9 = arith.constant dense<0.000000e+00> : vector<1x8x128xf32>
    %21 = tpu.matmul %18, %12, %cst_9 {dimension_numbers = #tpu.dot_dimension_numbers<[2], [1], [1], [2], [0, 0, 0, 1, 1, 2], [0], [0]>} : vector<1x8x8xf32>, vector<1x8x128xf32>, vector<1x8x128xf32> -> vector<1x8x128xf32>
    "tpu.trace_stop"() : () -> ()
    %22 = tpu.reciprocal %20 {approx = true} : vector<1x8x1xf32> -> vector<1x8x1xf32>
    %23 = vector.broadcast %22 : vector<1x8x1xf32> to vector<1x8x128xf32>
    %24 = arith.mulf %21, %23 : vector<1x8x128xf32>
    %c0_10 = arith.constant 0 : index
    %c0_11 = arith.constant 0 : index
    %25 = vector.load %arg4[%c0_10, %c0_11] : memref<1x128xf32, #tpu.memory_space<vmem>>, vector<1x128xf32>
    %c0_12 = arith.constant 0 : index
    %26 = memref.load %arg5[%c0_12] : memref<1xf32, #tpu.memory_space<smem>>
    %cst_13 = arith.constant dense<0.000000e+00> : vector<1x8xf32>
    %27 = vector.multi_reduction <add>, %24, %cst_13 [2] : vector<1x8x128xf32> to vector<1x8xf32>
    %28 = vector.shape_cast %27 : vector<1x8xf32> to vector<1x8x1xf32>
    %29 = arith.mulf %24, %24 : vector<1x8x128xf32>
    %cst_14 = arith.constant dense<0.000000e+00> : vector<1x8xf32>
    %30 = vector.multi_reduction <add>, %29, %cst_14 [2] : vector<1x8x128xf32> to vector<1x8xf32>
    %31 = vector.shape_cast %30 : vector<1x8xf32> to vector<1x8x1xf32>
    %cst_15 = arith.constant 3.125000e-02 : f32
    %32 = vector.broadcast %cst_15 : f32 to vector<1x8x1xf32>
    %33 = arith.mulf %28, %32 : vector<1x8x1xf32>
    %cst_16 = arith.constant 3.125000e-02 : f32
    %34 = vector.broadcast %cst_16 : f32 to vector<1x8x1xf32>
    %35 = arith.mulf %31, %34 : vector<1x8x1xf32>
    %36 = arith.mulf %33, %33 : vector<1x8x1xf32>
    %37 = arith.subf %35, %36 : vector<1x8x1xf32>
    %38 = vector.broadcast %33 : vector<1x8x1xf32> to vector<1x8x128xf32>
    %39 = arith.subf %24, %38 : vector<1x8x128xf32>
    %cst_17 = arith.constant 9.99999974E-6 : f32
    %40 = vector.broadcast %cst_17 : f32 to vector<1x8x1xf32>
    %41 = arith.addf %37, %40 : vector<1x8x1xf32>
    %42 = math.rsqrt %41 : vector<1x8x1xf32>
    %43 = vector.broadcast %42 : vector<1x8x1xf32> to vector<1x8x128xf32>
    %44 = arith.mulf %39, %43 : vector<1x8x128xf32>
    %45 = vector.shape_cast %25 : vector<1x128xf32> to vector<1x1x128xf32>
    %46 = vector.broadcast %45 : vector<1x1x128xf32> to vector<1x8x128xf32>
    %47 = arith.mulf %46, %44 : vector<1x8x128xf32>
    %cst_18 = arith.constant dense<0.000000e+00> : vector<1x8xf32>
    %48 = vector.multi_reduction <add>, %47, %cst_18 [2] : vector<1x8x128xf32> to vector<1x8xf32>
    %49 = vector.broadcast %26 : f32 to vector<1x8xf32>
    %50 = arith.addf %48, %49 : vector<1x8xf32>
    %51 = vector.shape_cast %50 : vector<1x8xf32> to vector<8xf32>
    %c0_19 = arith.constant 0 : index
    %c0_20 = arith.constant 0 : index
    %c0_21 = arith.constant 0 : index
    %52 = vector.load %arg6[%c0_19, %c0_20, %c0_21] : memref<1x1x8xf32, #tpu.memory_space<vmem>>, vector<1x1x8xf32>
    %53 = vector.shape_cast %52 : vector<1x1x8xf32> to vector<8xf32>
    %54 = vector.shape_cast %51 : vector<8xf32> to vector<1x1x8xf32>
    tpu.vector_store %arg6[%c0_19, %c0_20, %c0_21], %54 {strides = array<i32>} : memref<1x1x8xf32, #tpu.memory_space<vmem>>, vector<1x1x8xf32>,
    return
  }
  func.func @transform_0(%arg0: i32) -> (i32, i32, i32) {
    %c0_i32 = arith.constant 0 : i32
    %c0_i32_0 = arith.constant 0 : i32
    %c0_i32_1 = arith.constant 0 : i32
    return %arg0, %c0_i32, %c0_i32_0 : i32, i32, i32
  }
  func.func @transform_1(%arg0: i32) -> (i32, i32) {
    %c0_i32 = arith.constant 0 : i32
    %c0_i32_0 = arith.constant 0 : i32
    %c0_i32_1 = arith.constant 0 : i32
    return %c0_i32, %c0_i32_0 : i32, i32
  }
  func.func @transform_2(%arg0: i32) -> (i32, i32) {
    %c0_i32 = arith.constant 0 : i32
    %c0_i32_0 = arith.constant 0 : i32
    %c0_i32_1 = arith.constant 0 : i32
    return %c0_i32, %c0_i32_0 : i32, i32
  }
  func.func @transform_3(%arg0: i32) -> (i32, i32) {
    %c0_i32 = arith.constant 0 : i32
    %c0_i32_0 = arith.constant 0 : i32
    %c0_i32_1 = arith.constant 0 : i32
    return %c0_i32, %c0_i32_0 : i32, i32
  }
  func.func @transform_4(%arg0: i32) -> i32 {
    %c0_i32 = arith.constant 0 : i32
    %c0_i32_0 = arith.constant 0 : i32
    return %c0_i32 : i32
  }
  func.func @transform_5(%arg0: i32) -> (i32, i32, i32) {
    %c0_i32 = arith.constant 0 : i32
    %c0_i32_0 = arith.constant 0 : i32
    %c0_i32_1 = arith.constant 0 : i32
    return %arg0, %c0_i32, %c0_i32_0 : i32, i32, i32
  }
}

module attributes {stable_mosaic.version = 11 : i64} {
  func.func @_input_masker_kernel(%arg0: i32, %arg1: memref<1x8x32xf32, #tpu.memory_space<vmem>>, %arg2: memref<32x384xf32, #tpu.memory_space<vmem>>, %arg3: memref<1x384xf32, #tpu.memory_space<vmem>>, %arg4: memref<1x128xf32, #tpu.memory_space<vmem>>, %arg5: memref<1xf32, #tpu.memory_space<smem>>, %arg6: memref<1x1x8xf32, #tpu.memory_space<vmem>>) attributes {dimension_semantics = [#tpu.dimension_semantics<parallel>], iteration_bounds = array<i64: 2>, scalar_prefetch = 0 : i64, scratch_operands = 0 : i64, tpu.core_type = #tpu.core_type<tc>, window_params = [{transform_indices = @transform_0, window_bounds = array<i64: 1, 8, 32>}, {pipeline_mode = #tpu.pipeline_mode<synchronous>, transform_indices = @transform_1, window_bounds = array<i64: 32, 384>}, {pipeline_mode = #tpu.pipeline_mode<synchronous>, transform_indices = @transform_2, window_bounds = array<i64: 1, 384>}, {pipeline_mode = #tpu.pipeline_mode<synchronous>, transform_indices = @transform_3, window_bounds = array<i64: 1, 128>}, {transform_indices = @transform_4, window_bounds = array<i64: 1>}, {transform_indices = @transform_5, window_bounds = array<i64: 1, 1, 8>}]} {
    %c0 = arith.constant 0 : index
    %c0_0 = arith.constant 0 : index
    %c0_1 = arith.constant 0 : index
    %0 = vector.load %arg1[%c0, %c0_0, %c0_1] : memref<1x8x32xf32, #tpu.memory_space<vmem>>, vector<1x8x32xf32>
    %1 = vector.shape_cast %0 : vector<1x8x32xf32> to vector<8x32xf32>
    %c0_2 = arith.constant 0 : index
    %c0_3 = arith.constant 0 : index
    %2 = vector.load %arg2[%c0_2, %c0_3] : memref<32x384xf32, #tpu.memory_space<vmem>>, vector<32x384xf32>
    %cst = arith.constant dense<0.000000e+00> : vector<8x384xf32>
    %3 = tpu.matmul %1, %2, %cst {dimension_numbers = #tpu.dot_dimension_numbers<[1], [0], [0], [1], [0, 0, 1, 1], [], []>} : vector<8x32xf32>, vector<32x384xf32>, vector<8x384xf32> -> vector<8x384xf32>
    %c0_4 = arith.constant 0 : index
    %c0_5 = arith.constant 0 : index
    %4 = vector.load %arg3[%c0_4, %c0_5] : memref<1x384xf32, #tpu.memory_space<vmem>>, vector<1x384xf32>
    %5 = vector.broadcast %4 : vector<1x384xf32> to vector<8x384xf32>
    %6 = arith.addf %3, %5 : vector<8x384xf32>
    %7 = vector.extract_strided_slice %6 {offsets = [0, 0], sizes = [8, 128], strides = [1, 1]} : vector<8x384xf32> to vector<8x128xf32>
    %8 = vector.shape_cast %7 : vector<8x128xf32> to vector<1x8x128xf32>
    %9 = vector.extract_strided_slice %6 {offsets = [0, 128], sizes = [8, 128], strides = [1, 1]} : vector<8x384xf32> to vector<8x128xf32>
    %10 = vector.shape_cast %9 : vector<8x128xf32> to vector<1x8x128xf32>
    %11 = vector.extract_strided_slice %6 {offsets = [0, 256], sizes = [8, 128], strides = [1, 1]} : vector<8x384xf32> to vector<8x128xf32>
    %12 = vector.shape_cast %11 : vector<8x128xf32> to vector<1x8x128xf32>
    "tpu.trace_start"() <{level = 10 : i32, message = "bqd,bkd->bqk"}> : () -> ()
    %cst_6 = arith.constant dense<0.000000e+00> : vector<1x8x8xf32>
    %13 = tpu.matmul %8, %10, %cst_6 {dimension_numbers = #tpu.dot_dimension_numbers<[2], [2], [1], [1], [0, 0, 0, 1, 1, 1], [0], [0]>} : vector<1x8x128xf32>, vector<1x8x128xf32>, vector<1x8x8xf32> -> vector<1x8x8xf32>
    "tpu.trace_stop"() : () -> ()
    %cst_7 = arith.constant dense<0xFF800000> : vector<1x8xf32>
    %14 = vector.multi_reduction <maximumf>, %13, %cst_7 [2] : vector<1x8x8xf32> to vector<1x8xf32>
    %15 = vector.shape_cast %14 : vector<1x8xf32> to vector<1x8x1xf32>
    %16 = vector.broadcast %15 : vector<1x8x1xf32> to vector<1x8x8xf32>
    %17 = arith.subf %13, %16 : vector<1x8x8xf32>
    %18 = math.exp %17 : vector<1x8x8xf32>
    %cst_8 = arith.constant dense<0.000000e+00> : vector<1x8xf32>
    %19 = vector.multi_reduction <add>, %18, %cst_8 [2] : vector<1x8x8xf32> to vector<1x8xf32>
    %20 = vector.shape_cast %19 : vector<1x8xf32> to vector<1x8x1xf32>
    "tpu.trace_start"() <{level = 10 : i32, message = "bqk,bkd->bqd"}> : () -> ()
    %cst_9 = arith.constant dense<0.000000e+00> : vector<1x8x128xf32>
    %21 = tpu.matmul %18, %12, %cst_9 {dimension_numbers = #tpu.dot_dimension_numbers<[2], [1], [1], [2], [0, 0, 0, 1, 1, 2], [0], [0]>} : vector<1x8x8xf32>, vector<1x8x128xf32>, vector<1x8x128xf32> -> vector<1x8x128xf32>
    "tpu.trace_stop"() : () -> ()
    %22 = tpu.reciprocal %20 {approx = true} : vector<1x8x1xf32> -> vector<1x8x1xf32>
    %23 = vector.broadcast %22 : vector<1x8x1xf32> to vector<1x8x128xf32>
    %24 = arith.mulf %21, %23 : vector<1x8x128xf32>
    %c0_10 = arith.constant 0 : index
    %c0_11 = arith.constant 0 : index
    %25 = vector.load %arg4[%c0_10, %c0_11] : memref<1x128xf32, #tpu.memory_space<vmem>>, vector<1x128xf32>
    %c0_12 = arith.constant 0 : index
    %26 = memref.load %arg5[%c0_12] : memref<1xf32, #tpu.memory_space<smem>>
    %cst_13 = arith.constant dense<0.000000e+00> : vector<1x8xf32>
    %27 = vector.multi_reduction <add>, %24, %cst_13 [2] : vector<1x8x128xf32> to vector<1x8xf32>
    %28 = vector.shape_cast %27 : vector<1x8xf32> to vector<1x8x1xf32>
    %29 = arith.mulf %24, %24 : vector<1x8x128xf32>
    %cst_14 = arith.constant dense<0.000000e+00> : vector<1x8xf32>
    %30 = vector.multi_reduction <add>, %29, %cst_14 [2] : vector<1x8x128xf32> to vector<1x8xf32>
    %31 = vector.shape_cast %30 : vector<1x8xf32> to vector<1x8x1xf32>
    %cst_15 = arith.constant 3.125000e-02 : f32
    %32 = vector.broadcast %cst_15 : f32 to vector<1x8x1xf32>
    %33 = arith.mulf %28, %32 : vector<1x8x1xf32>
    %cst_16 = arith.constant 3.125000e-02 : f32
    %34 = vector.broadcast %cst_16 : f32 to vector<1x8x1xf32>
    %35 = arith.mulf %31, %34 : vector<1x8x1xf32>
    %36 = arith.mulf %33, %33 : vector<1x8x1xf32>
    %37 = arith.subf %35, %36 : vector<1x8x1xf32>
    %38 = vector.broadcast %33 : vector<1x8x1xf32> to vector<1x8x128xf32>
    %39 = arith.subf %24, %38 : vector<1x8x128xf32>
    %cst_17 = arith.constant 9.99999974E-6 : f32
    %40 = vector.broadcast %cst_17 : f32 to vector<1x8x1xf32>
    %41 = arith.addf %37, %40 : vector<1x8x1xf32>
    %42 = math.rsqrt %41 : vector<1x8x1xf32>
    %43 = vector.broadcast %42 : vector<1x8x1xf32> to vector<1x8x128xf32>
    %44 = arith.mulf %39, %43 : vector<1x8x128xf32>
    %45 = vector.shape_cast %25 : vector<1x128xf32> to vector<1x1x128xf32>
    %46 = vector.broadcast %45 : vector<1x1x128xf32> to vector<1x8x128xf32>
    %47 = arith.mulf %46, %44 : vector<1x8x128xf32>
    %cst_18 = arith.constant dense<0.000000e+00> : vector<1x8xf32>
    %48 = vector.multi_reduction <add>, %47, %cst_18 [2] : vector<1x8x128xf32> to vector<1x8xf32>
    %49 = vector.broadcast %26 : f32 to vector<1x8xf32>
    %50 = arith.addf %48, %49 : vector<1x8xf32>
    %51 = vector.shape_cast %50 : vector<1x8xf32> to vector<8xf32>
    %c0_19 = arith.constant 0 : index
    %c0_20 = arith.constant 0 : index
    %c0_21 = arith.constant 0 : index
    %52 = vector.load %arg6[%c0_19, %c0_20, %c0_21] : memref<1x1x8xf32, #tpu.memory_space<vmem>>, vector<1x1x8xf32>
    %53 = vector.shape_cast %52 : vector<1x1x8xf32> to vector<8xf32>
    %54 = vector.shape_cast %51 : vector<8xf32> to vector<1x1x8xf32>
    tpu.vector_store %arg6[%c0_19, %c0_20, %c0_21], %54 {strides = array<i32>} : memref<1x1x8xf32, #tpu.memory_space<vmem>>, vector<1x1x8xf32>,
    return
  }
  func.func @transform_0(%arg0: i32) -> (i32, i32, i32) {
    %c0_i32 = arith.constant 0 : i32
    %c0_i32_0 = arith.constant 0 : i32
    %c0_i32_1 = arith.constant 0 : i32
    return %arg0, %c0_i32, %c0_i32_0 : i32, i32, i32
  }
  func.func @transform_1(%arg0: i32) -> (i32, i32) {
    %c0_i32 = arith.constant 0 : i32
    %c0_i32_0 = arith.constant 0 : i32
    %c0_i32_1 = arith.constant 0 : i32
    return %c0_i32, %c0_i32_0 : i32, i32
  }
  func.func @transform_2(%arg0: i32) -> (i32, i32) {
    %c0_i32 = arith.constant 0 : i32
    %c0_i32_0 = arith.constant 0 : i32
    %c0_i32_1 = arith.constant 0 : i32
    return %c0_i32, %c0_i32_0 : i32, i32
  }
  func.func @transform_3(%arg0: i32) -> (i32, i32) {
    %c0_i32 = arith.constant 0 : i32
    %c0_i32_0 = arith.constant 0 : i32
    %c0_i32_1 = arith.constant 0 : i32
    return %c0_i32, %c0_i32_0 : i32, i32
  }
  func.func @transform_4(%arg0: i32) -> i32 {
    %c0_i32 = arith.constant 0 : i32
    %c0_i32_0 = arith.constant 0 : i32
    return %c0_i32 : i32
  }
  func.func @transform_5(%arg0: i32) -> (i32, i32, i32) {
    %c0_i32 = arith.constant 0 : i32
    %c0_i32_0 = arith.constant 0 : i32
    %c0_i32_1 = arith.constant 0 : i32
    return %arg0, %c0_i32, %c0_i32_0 : i32, i32, i32
  }
}

</mosaic_0001>

<bundles_post_ra>
// kernel: tpu_custom_call.1
= control target key start
LH: loop header
LB: loop body
LE: loop exit
PB: predicated region body
PF: predicated region fallthrough
CT: control target
= control target key end

     0   :  { %s1162_s0 = inlined_call_operand.hbm [shape: f32[2,8,32], index: 0, kind: input, shape index: {}]   ;;  %s1163_s1 = inlined_call_operand.hbm [shape: f32[32,384], index: 1, kind: input, shape index: {}]   ;;  %s1164_s2 = inlined_call_operand.vmem [shape: f32[1,384], index: 2, kind: input, shape index: {}]   ;;  %s1165_s3 = inlined_call_operand.vmem [shape: f32[1,128], index: 3, kind: input, shape index: {}]   ;;  %s1166_s4 = inlined_call_operand.<no memory space> [shape: f32[1], index: 4, kind: input, shape index: {}]   ;;  %s1167_s5 = inlined_call_operand.hbm [shape: f32[2,1,8], index: 5, kind: output, shape index: {}]  }
   0x1   :  { %10 = sst [smem:[#allocation2]] %s1166_s4 }
   0x2   :  { %11 = vsyncpa [#allocation4], 0 }
   0x3   :  { %13 = vsyncpa [#allocation4 + $0x1], 0 }
   0x4   :  { %14 = vsyncpa [#allocation7], 0 }
   0x5   :  { %15 = vsyncpa [#allocation5], 0 }
   0x6   :  { %17 = vsyncpa [#allocation5 + $0x1], 0  ;;  %s987_s20 = smov 0   ;;  %s989_s21 = smov 0  }
   0x7   :  { %s991_s22 = smov 0   ;;  %s993_s23 = smov 0  }
   0x8 LB: > { %s1008_s4 = sadd.s32 4294967295, %s945_s23   ;;  %s710_s24 = sadd.s32 4294967294, %s945_s23   ;;  %s945_s23 = sphi %s993_s23, %s1189_s23   ;;  %s941_s22 = sphi %s991_s22, %s1188_s22   ;;  %s937_s21 = sphi %s989_s21, %s1187_s21   ;;  %s933_s20 = sphi %s987_s20, %s1186_s20  }
   0x9   : > { %p43_p0 = scmp.ne.s32.totalorder %s937_s21, %s933_s20  ;;  %p1168_p1 = scmp.eq.s32.totalorder %s1008_s4, 0 }
   0xa   : > { %p157_p3 = scmp.eq.s32.totalorder %s710_s24, 1  ;;  %p711_p5 = scmp.ge.s32.totalorder %s945_s23, 1 }
   0xb   : > { %p1017_p4 = por %p1168_p1, %p43_p0  ;;  %p164_p7 = scmp.lt.s32.totalorder %s945_s23, 3 }
   0xc   : > { %p1022_p6 = por %p157_p3, %p43_p0  ;;  %s947_s28 = smov [#allocation6]  }
   0xd   : > { %s1172_s25 = scalar_select %p1017_p4, 1, 0 }
   0xe   : > { %s1173_s26 = scalar_select %p1022_p6, 1, 0 }
   0xf   : > { %p1027_p8 = pnand %p711_p5, %p164_p7  ;;  %s176_s29 = sshll.u32 %s947_s28, 4  ;;  %s177_s29 = int_to_ptr.vmem [resolvable:$true] %s176_s29 }
  0x10   : > { %s1041_s6 = sadd.s32 1, %s945_s23   ;;  %s30_s7 = sadd.s32 1, %s941_s22 }
  0x11   : > { %s1174_s27 = scalar_select %p1027_p8, 1, 0 }
  0x12   : > { %p764_p9 = pneg %p1027_p8  ;;  %s27_s8 = ssub.s32 %s945_s23, %s1041_s6 }
  0x13   : > { %s834_s9 = scalar_lea.vmem %s177_s29, 1536  ;;  %p842_p5 = scmp.lt.s32.totalorder %s177_s29, %s177_s29 }
  0x14   : > { %p1036_p11 = pnand %p764_p9, %p1168_p1  ;;  %p835_p13 = scmp.ne.s32.totalorder %s177_s29, %s834_s9 }
  0x15   : > { %p843_p7 = scmp.lt.s32.totalorder %s834_s9, %s834_s9 }
  0x16   : > { %p825_p12 = pneg %p1036_p11 }
  0x17   : > { %p844_p10 = por %p843_p7, %p842_p5 }
  0x18   : > { %p837_p0 = pnand %p835_p13, %p825_p12 }
  0x1a   : > { %p838_p3 = pneg %p837_p0 }
  0x1c   : > { %p845_p2 = pnand %p844_p10, %p838_p3 }
  0x1e   : > { %848 = shalt.err (!%p845_p2)
}
  0x1f   : > { %s948_s10 = smov 384   ;;  %s949_s11 = smov 24  }
  0x20   : > { %767 = dma.hbm_to_vmem [thread:$0]  (!%p1036_p11), %s1163_s1, 1536, %s177_s29, [#allocation7], %s948_s10, %s948_s10, %s949_s11  }
  0x21   : > { %p28_p9 = scmp.eq.s32.totalorder %s27_s8, 0  ;;  %p37_p12 = scmp.ne.s32.totalorder %s941_s22, %s937_s21 }
  0x22   : > { %p38_p10 = scmp.eq.s32.totalorder %s945_s23, 0  ;;  %p777_p2 = scmp.lt.s32.totalorder %s945_s23, 2 }
  0x23   : > { %s1058_s14 = scalar_select %p28_p9, %s941_s22, %s30_s7  }
  0x24   : > { %p39_p13 = por %p38_p10, %p37_p12  ;;  %p1176_p0 = scmp.eq.s32.totalorder %s1008_s4, 1 }
  0x25   : > { %s199_s16 = sand.u32 1, %s941_s22   ;;  %s715_s17 = sshll.u32 %s945_s23, 7 }
  0x26   : > { %p1062_p3 = por %p1176_p0, %p37_p12  ;;  %s714_s18 = sshll.u32 %s199_s16, 3 }
  0x27   : > { %s1071_s28 = scalar_lea.hbm %s1162_s0, %s715_s17  ;;  %s203_s29 = scalar_lea.vmem [#allocation3], %s714_s18 }
  0x28   : > { %s1177_s15 = scalar_select %p1062_p3, 1, 0 }
  0x29   : > { %s210_s30 = sshll.u32 %s203_s29, 4  ;;  %p1073_p11 = pnand %p777_p2, %p39_p13  ;;  %s211_s30 = int_to_ptr.vmem [resolvable:$true] %s210_s30 }
  0x2a   : > { %s200_s8 = scalar_lea.sflag [#allocation4], %s199_s16  ;;  %s849_s9 = scalar_lea.hbm %s1071_s28, 128 }
  0x2b   : > { %p850_p5 = scmp.ne.s32.totalorder %s1071_s28, %s849_s9  ;;  %p851_p7 = pneg %p1073_p11 }
  0x2c   : > { %s854_s12 = scalar_lea.hbm %s1162_s0, 256  ;;  %p855_p10 = scmp.lt.s32.totalorder %s1071_s28, %s1162_s0 }
  0x2d   : > { %p852_p9 = pnand %p851_p7, %p850_p5  ;;  %p856_p2 = scmp.lt.s32.totalorder %s854_s12, %s849_s9 }
  0x2f   : > { %p853_p12 = pneg %p852_p9  ;;  %p857_p13 = por %p856_p2, %p855_p10 }
  0x31   : > { %p858_p0 = pnand %p857_p13, %p853_p12 }
  0x33   : > { %861 = shalt.err (!%p858_p0)
}
  0x34   : > { %s862_s18 = scalar_lea.vmem %s211_s30, 128  ;;  %s950_s16 = smov [#allocation3]  }
  0x35   : > { %p863_p1 = scmp.ne.s32.totalorder %s211_s30, %s862_s18  ;;  %s867_s19 = sshll.u32 %s950_s16, 4  ;;  %s868_s19 = int_to_ptr.vmem [resolvable:$false] %s867_s19 }
  0x36   : > { %s869_s24 = scalar_lea.vmem %s868_s19, 256  ;;  %p870_p5 = scmp.lt.s32.totalorder %s211_s30, %s868_s19 }
  0x37   : > { %p865_p6 = pnand %p863_p1, %p851_p7  ;;  %p871_p9 = scmp.lt.s32.totalorder %s869_s24, %s862_s18 }
  0x39   : > { %p866_p3 = pneg %p865_p6  ;;  %p872_p4 = por %p871_p9, %p870_p5 }
  0x3b   : > { %p873_p8 = pnand %p872_p4, %p866_p3 }
  0x3d   : > { %876 = shalt.err (!%p873_p8)
}
  0x3e   : > { %771 = dma.hbm_to_vmem [thread:$0]  (!%p1073_p11), %s1071_s28, 128, %s211_s30, %s200_s8  }
  0x3f   : > { %p1179_p12 = scmp.ne.s32.totalorder %s1174_s27, 0 }
  0x40   : > { %s1094_s29 = sand.u32 (!%p1179_p12), 1, %s937_s21   ;;  %p1180_p1 = scmp.ne.s32.totalorder (!%p1179_p12), %s1172_s25, 0 }
  0x41   : > { %219 = sbr.rel (%p1179_p12) target bundleno = 1150 (0x47e), region = 40  ;;  %s717_s9 = sshll.u32 (!%p1179_p12), %s1094_s29, 3 }
  0x42   : > { %s222_s10 = scalar_lea.sflag (!%p1179_p12), [#allocation4], %s1094_s29  ;;  %s225_s11 = scalar_lea.vmem (!%p1179_p12), [#allocation3], %s717_s9 }
  0x46   : > { %920 = dma.done.wait (%p1180_p1), %s222_s10, 128  }
  0x47   : > { %922 = vsyncadd (%p1180_p1), %s222_s10, 4294967168  ;;  %p1181_p4 = scmp.eq.s32.totalorder %s1008_s4, 0 }
  0x49   : > { %924 = dma.done.wait (%p1181_p4), [#allocation7], 1536   ;;  %p1182_p6 = pmov %p1181_p4 }
  0x4a   : > { %v951_v0 = vmov 0.0   ;;  %v266_v1 = vld [vmem:[#allocation6 + $0x50] sm:$0xff]  ;;  %v265_v2 = vld [vmem:[#allocation6 + $0x48] sm:$0xff]  ;;  %v263_v3 = vld [vmem:[#allocation6 + $0x38] sm:$0xff]  ;;  %vm285_vm0 = vcmask 261120   ;;  %vm952_vm1 = vmmov 0   ;;  %v270_v14 = vlaneseq }
  0x4b   : > { %926 = vsyncadd (%p1182_p6), [#allocation7], 4294965760  ;;  %353 = vmatprep.mubr.f32.mxu0 %v951_v0  ;;  %735 = vmatprep.subr.mxu1 %v951_v0  ;;  %v262_v4 = vld [vmem:[#allocation6 + $0x30] sm:$0xff]  ;;  %v260_v5 = vld [vmem:[#allocation6 + $0x20] sm:$0xff]  ;;  %vm500_vm2 = vcmask 64512   ;;  %s586_s7 = sld [smem:[#allocation2]] }
  0x4c   : > { %313 = vmatprep.subr.mxu0 %v266_v1  ;;  %v259_v6 = vld [vmem:[#allocation6 + $0x18] sm:$0xff]  ;;  %v257_v7 = vld [vmem:[#allocation6 + $0x8] sm:$0xff]  ;;  %v256_v8 = vld [vmem:[#allocation6] sm:$0xff]  ;;  %743 = vmatprep.mubr.msk.f32.mxu1 %vm952_vm1, %v951_v0  ;;  %v1111_v15 = vshrl.u32 %v270_v14, 7  ;;  %v613_v56 = vand.u32 127, %v270_v14  ;;  %s723_s8 = sshll.u32 %s1008_s4, 4 }
  0x4d   : > { %314 = vmatpush1.msra.mxu0 %v265_v2  ;;  %v255_v9 = vld [vmem:[%s225_s11] sm:$0xff]  ;;  %v264_v11 = vld [vmem:[#allocation6 + $0x40] sm:$0xff]  ;;  %v261_v12 = vld [vmem:[#allocation6 + $0x28] sm:$0xff]  ;;  %s254_s12 = scalar_lea.vmem [#allocation8], %s1094_s29  ;;  %vm619_vm3 = vcmask 57344   ;;  %s632_s16 = scalar_lea.hbm %s1167_s5, %s723_s8 }
  0x4e   : > { %315 = vmatprep.subr.mxu0 %v263_v3  ;;  %v267_v10 = vld [vmem:[#allocation6 + $0x58] sm:$0xff]  ;;  %v258_v13 = vld [vmem:[#allocation6 + $0x10] sm:$0xff]  ;;  %v276_v16 = vsub.s32 1, %v1111_v15  ;;  %v272_v18 = vsub.s32 0, %v1111_v15  ;;  %v280_v28 = vsub.s32 2, %v1111_v15  ;;  %v616_v58 = vsub.s32 %v613_v56, %v1111_v15  ;;  %s634_s13 = sshll.u32 %s254_s12, 4  ;;  %s635_s13 = int_to_ptr.vmem [resolvable:$true] %s634_s13 }
  0x4f   : > { %316 = vmatpush1.msra.mxu0 %v262_v4  ;;  %736 = vmatpush3.msra.mxu1 %v267_v10  ;;  %v268_v17 = vld [vmem:[%s1164_s2] sm:$0x7]  ;;  %s622_s19 = scalar_lea.sflag [#allocation5], %s1094_s29  ;;  %s877_s24 = scalar_lea.vmem %s635_s13, 16 }
  0x50   : > { %317 = vmatprep.subr.mxu0 %v260_v5  ;;  %737 = vmatprep.subr.mxu1 %v951_v0  ;;  %v277_v19 = vrot.slane %v268_v17, %v276_v16  ;;  %v273_v21 = vrot.slane %v268_v17, %v272_v18  ;;  %v281_v30 = vrot.slane %v268_v17, %v280_v28  ;;  %v722_v53 = vld [vmem:[%s1165_s3] ss:$0 sm:$0xff]  ;;  %p878_p8 = scmp.ne.s32.totalorder %s635_s13, %s877_s24  ;;  %p1183_p3 = scmp.ne.s32.totalorder %s1177_s15, 0 }
  0x51   : > { %318 = vmatpush1.msra.mxu0 %v259_v6  ;;  %738 = vmatpush3.msra.mxu1 %v264_v11  ;;  %v609_v57 = vstv %s586_s7  ;;  %s953_s9 = smov [#allocation8]  }
  0x52   : > { %319 = vmatprep.subr.mxu0 %v257_v7  ;;  %739 = vmatprep.subr.mxu1 %v951_v0  ;;  %p879_p11 = pnand %p878_p8, %p1183_p3  ;;  %s881_s10 = sshll.u32 %s953_s9, 4  ;;  %s882_s10 = int_to_ptr.vmem [resolvable:$false] %s881_s10 }
  0x53   : > { %320 = vmatpush1.msra.mxu0 %v256_v8  ;;  %740 = vmatpush3.msra.mxu1 %v261_v12  ;;  %s883_s4 = scalar_lea.vmem %s882_s10, 32  ;;  %p884_p10 = scmp.lt.s32.totalorder %s635_s13, %s882_s10 }
  0x54   : > { %719 = vmatmul.mubr.msk.f32.vlgmr.msra.gmra.mxu0 %vm285_vm0, %v255_v9  ;;  %746 = vmatprep.subr.mxu0 %v951_v0  ;;  %p880_p7 = pneg %p879_p11  ;;  %p885_p2 = scmp.lt.s32.totalorder %s883_s4, %s877_s24 }
  0x55   : > { %748 = vmatprep.mubr.msk.f32.mxu0 %vm952_vm1, %v951_v0  ;;  %741 = vmatprep.subr.mxu1 %v951_v0 }
  0x56   : > { %742 = vmatpush3.msra.mxu1 %v258_v13  ;;  %p886_p13 = por %p885_p2, %p884_p10 }
  0x57   : > { %744 = vmatmul.mubr.msk.f32.vlgmr.msra.gmra.mxu1 %vm285_vm0, %v255_v9  ;;  %751 = vmatprep.subr.mxu1 %v951_v0 }
  0x58   : > { %753 = vmatprep.mubr.msk.f32.mxu1 %vm952_vm1, %v951_v0  ;;  %p887_p0 = pnand %p886_p13, %p880_p7 }
 0x114   : > { %v355_v20 = vpop.f32.mrf.mxu0 }
 0x115   : > { %v356_v24 = vadd.f32 %v355_v20, %v273_v21 }
 0x116   : > { %v357_v22 = vpop.f32.mrf.mxu0 }
 0x117   : > { %v358_v23 = vadd.f32 %v357_v22, %v277_v19  ;;  %v426_v29 = vpop.f32.mrf.mxu1 }
 0x118   : > { %v427_v32 = vadd.f32 %v426_v29, %v281_v30 }
 0x119   : > { %747 = vmatpush3.xpose.msra.mxu0 %v358_v23  ;;  %v745_v31 = vpop.f32.mrf.mxu1 }
 0x11a   : > { %752 = vmatpush3.msra.mxu1 %v427_v32 }
 0x11c   : > { %749 = vmatmul.mubr.f32.vlgmr.msra.gmra.mxu0 %v356_v24 }
 0x1dc   : > { %v496_v25 = vpop.f32.mrf.mxu0 }
 0x1dd   : > { %v501_v26 = vsel %vm500_vm2, %v496_v25, -inf }
 0x1de   : > { %502 = vmax.xlane.f32.xlu0 %v501_v26  ;;  %v750_v27 = vpop.f32.mrf.mxu0 }
 0x267   : > { %v503_v33 = vpop.xlane.xlu0 %502 }
 0x268   : > { %v504_v34 = vsub.f32 %v496_v25, %v503_v33 }
 0x26a   : > { %v505_v35 = vmul.f32 1.442695, %v504_v34 }
 0x26c   : > { %817 = vpow2.f32 %v505_v35 }
 0x279   : > { %v818_v36 = vpop.eup %817 }
 0x27a   : > { %754 = vmatmul.mubr.msk.f32.vlgmr.msra.gmra.mxu1 %vm500_vm2, %v818_v36  ;;  %v507_v37 = vsel %vm500_vm2, %v818_v36, 0.0 }
 0x27b   : > { %508 = vadd.xlane.f32.xlu0 %v507_v37 }
 0x304   : > { %v509_v38 = vpop.xlane.xlu0 %508 }
 0x305   : > { %819 = vrcp.f32 %v509_v38 }
 0x312   : > { %v820_v39 = vpop.eup %819 }
 0x33a   : > { %v579_v40 = vpop.f32.mrf.mxu1 }
 0x33b   : > { %v584_v41 = vmul.f32 %v820_v39, %v579_v40 }
 0x33c   : > { %v755_v42 = vpop.f32.mrf.mxu1 }
 0x33d   : > { %587 = vadd.xlane.f32.xlu1 %v584_v41  ;;  %v589_v43 = vmul.f32 %v584_v41, %v584_v41 }
 0x341   : > { %590 = vadd.xlane.f32.xlu1 %v589_v43 }
 0x3c6   : > { %v588_v44 = vpop.xlane.xlu1 %587 }
 0x3c7   : > { %v592_v45 = vmul.f32 0.03125, %v588_v44 }
 0x3c9   : > { %v594_v47 = vmul.f32 %v592_v45, %v592_v45  ;;  %v596_v51 = vsub.f32 %v584_v41, %v592_v45 }
 0x3ca   : > { %v591_v46 = vpop.xlane.xlu1 %590 }
 0x3cb   : > { %v593_v48 = vmul.f32 0.03125, %v591_v46 }
 0x3cd   : > { %v595_v49 = vsub.f32 %v593_v48, %v594_v47 }
 0x3cf   : > { %v597_v50 = vadd.f32 1e-05, %v595_v49 }
 0x3d1   : > { %821 = vrsqrt.f32 %v597_v50 }
 0x3de   : > { %v822_v52 = vpop.eup %821 }
 0x3df   : > { %v599_v54 = vmul.f32 %v822_v52, %v596_v51 }
 0x3e1   : > { %v606_v55 = vmul.f32 %v722_v53, %v599_v54 }
 0x3e3   : > { %607 = vadd.xlane.f32.xlu0 %v606_v55 }
 0x46c   : > { %v608_v59 = vpop.xlane.xlu0 %607 }
 0x46d   : > { %v610_v60 = vadd.f32 %v609_v57, %v608_v59 }
 0x46f   : > { %v617_v61 = vrot.slane %v610_v60, %v616_v58 }
 0x471   : > { %620 = vst.msk [vmem:[%s254_s12] sm:$0x1] %vm619_vm3, %v617_v61 }
 0x472   : > { %890 = shalt.err (!%p887_p0)
}
 0x473   : > { %s891_s11 = scalar_lea.hbm %s632_s16, 16  ;;  %s895_s27 = scalar_lea.hbm %s1167_s5, 32 }
 0x474   : > { %p892_p5 = scmp.ne.s32.totalorder %s632_s16, %s891_s11  ;;  %p896_p1 = scmp.lt.s32.totalorder %s632_s16, %s1167_s5 }
 0x475   : > { %p897_p4 = scmp.lt.s32.totalorder %s895_s27, %s891_s11 }
 0x476   : > { %p893_p9 = pnand %p892_p5, %p1183_p3 }
 0x477   : > { %p898_p6 = por %p897_p4, %p896_p1 }
 0x478   : > { %p894_p12 = pneg %p893_p9 }
 0x47a   : > { %p899_p8 = pnand %p898_p6, %p894_p12 }
 0x47c   : > { %902 = shalt.err (!%p899_p8)
}
 0x47d   : > { %762 = dma.vmem_to_hbm [thread:$0]  (%p1183_p3), %s635_s13, 16, %s632_s16, %s622_s19  }
 0x47e PF: > { %s646_s7 = sand.u32 1, %s933_s20   ;;  %p1184_p11 = scmp.ne.s32.totalorder %s1173_s26, 0 }
 0x47f   : > { %p1185_p7 = scmp.ge.s32.totalorder %s945_s23, 2  ;;  %s647_s8 = scalar_lea.sflag [#allocation5], %s646_s7 }
 0x481   : > { %p773_p10 = pnand %p1185_p7, %p1184_p11 }
 0x483   : > { %p774_p2 = pneg %p773_p10 }
 0x485   : > { %928 = dma.done.wait (%p774_p2), %s647_s8, 16  }
 0x486   : > { %930 = vsyncadd (%p774_p2), %s647_s8, 4294967280  ;;  %p20_p13 = scmp.ge.s32.totalorder %s1041_s6, 4   ;;  %s1186_s20 = smov %s937_s21 }
 0x487   : > { %s1187_s21 = smov %s941_s22  ;;  %s1188_s22 = smov %s1058_s14 }
 0x488   : > { %s1189_s23 = smov %s1041_s6  ;;  %22 = sbr.rel (!%p20_p13) target bundleno = 8 (0x8), region = 89 }
 0x48d   :  { %651 = vsyncpa [#allocation4], 1 }
 0x48e   :  { %653 = vsyncpa [#allocation4 + $0x1], 1 }
 0x48f   :  { %654 = vsyncpa [#allocation7], 1 }
 0x490   :  { %655 = vsyncpa [#allocation5], 1 }
 0x491   :  { %657 = vsyncpa [#allocation5 + $0x1], 1 }

// kernel: tpu_custom_call.1
= control target key start
LH: loop header
LB: loop body
LE: loop exit
PB: predicated region body
PF: predicated region fallthrough
CT: control target
= control target key end

     0   :  { %s1162_s0 = inlined_call_operand.hbm [shape: f32[2,8,32], index: 0, kind: input, shape index: {}]   ;;  %s1163_s1 = inlined_call_operand.hbm [shape: f32[32,384], index: 1, kind: input, shape index: {}]   ;;  %s1164_s2 = inlined_call_operand.vmem [shape: f32[1,384], index: 2, kind: input, shape index: {}]   ;;  %s1165_s3 = inlined_call_operand.vmem [shape: f32[1,128], index: 3, kind: input, shape index: {}]   ;;  %s1166_s4 = inlined_call_operand.<no memory space> [shape: f32[1], index: 4, kind: input, shape index: {}]   ;;  %s1167_s5 = inlined_call_operand.hbm [shape: f32[2,1,8], index: 5, kind: output, shape index: {}]  }
   0x1   :  { %10 = sst [smem:[#allocation2]] %s1166_s4 }
   0x2   :  { %11 = vsyncpa [#allocation4], 0 }
   0x3   :  { %13 = vsyncpa [#allocation4 + $0x1], 0 }
   0x4   :  { %14 = vsyncpa [#allocation7], 0 }
   0x5   :  { %15 = vsyncpa [#allocation5], 0 }
   0x6   :  { %17 = vsyncpa [#allocation5 + $0x1], 0  ;;  %s987_s20 = smov 0   ;;  %s989_s21 = smov 0  }
   0x7   :  { %s991_s22 = smov 0   ;;  %s993_s23 = smov 0  }
   0x8 LB: > { %s1008_s4 = sadd.s32 4294967295, %s945_s23   ;;  %s710_s24 = sadd.s32 4294967294, %s945_s23   ;;  %s945_s23 = sphi %s993_s23, %s1189_s23   ;;  %s941_s22 = sphi %s991_s22, %s1188_s22   ;;  %s937_s21 = sphi %s989_s21, %s1187_s21   ;;  %s933_s20 = sphi %s987_s20, %s1186_s20  }
   0x9   : > { %p43_p0 = scmp.ne.s32.totalorder %s937_s21, %s933_s20  ;;  %p1168_p1 = scmp.eq.s32.totalorder %s1008_s4, 0 }
   0xa   : > { %p157_p3 = scmp.eq.s32.totalorder %s710_s24, 1  ;;  %p711_p5 = scmp.ge.s32.totalorder %s945_s23, 1 }
   0xb   : > { %p1017_p4 = por %p1168_p1, %p43_p0  ;;  %p164_p7 = scmp.lt.s32.totalorder %s945_s23, 3 }
   0xc   : > { %p1022_p6 = por %p157_p3, %p43_p0  ;;  %s947_s28 = smov [#allocation6]  }
   0xd   : > { %s1172_s25 = scalar_select %p1017_p4, 1, 0 }
   0xe   : > { %s1173_s26 = scalar_select %p1022_p6, 1, 0 }
   0xf   : > { %p1027_p8 = pnand %p711_p5, %p164_p7  ;;  %s176_s29 = sshll.u32 %s947_s28, 4  ;;  %s177_s29 = int_to_ptr.vmem [resolvable:$true] %s176_s29 }
  0x10   : > { %s1041_s6 = sadd.s32 1, %s945_s23   ;;  %s30_s7 = sadd.s32 1, %s941_s22 }
  0x11   : > { %s1174_s27 = scalar_select %p1027_p8, 1, 0 }
  0x12   : > { %p764_p9 = pneg %p1027_p8  ;;  %s27_s8 = ssub.s32 %s945_s23, %s1041_s6 }
  0x13   : > { %s834_s9 = scalar_lea.vmem %s177_s29, 1536  ;;  %p842_p5 = scmp.lt.s32.totalorder %s177_s29, %s177_s29 }
  0x14   : > { %p1036_p11 = pnand %p764_p9, %p1168_p1  ;;  %p835_p13 = scmp.ne.s32.totalorder %s177_s29, %s834_s9 }
  0x15   : > { %p843_p7 = scmp.lt.s32.totalorder %s834_s9, %s834_s9 }
  0x16   : > { %p825_p12 = pneg %p1036_p11 }
  0x17   : > { %p844_p10 = por %p843_p7, %p842_p5 }
  0x18   : > { %p837_p0 = pnand %p835_p13, %p825_p12 }
  0x1a   : > { %p838_p3 = pneg %p837_p0 }
  0x1c   : > { %p845_p2 = pnand %p844_p10, %p838_p3 }
  0x1e   : > { %848 = shalt.err (!%p845_p2)
}
  0x1f   : > { %s948_s10 = smov 384   ;;  %s949_s11 = smov 24  }
  0x20   : > { %767 = dma.hbm_to_vmem [thread:$0]  (!%p1036_p11), %s1163_s1, 1536, %s177_s29, [#allocation7], %s948_s10, %s948_s10, %s949_s11  }
  0x21   : > { %p28_p9 = scmp.eq.s32.totalorder %s27_s8, 0  ;;  %p37_p12 = scmp.ne.s32.totalorder %s941_s22, %s937_s21 }
  0x22   : > { %p38_p10 = scmp.eq.s32.totalorder %s945_s23, 0  ;;  %p777_p2 = scmp.lt.s32.totalorder %s945_s23, 2 }
  0x23   : > { %s1058_s14 = scalar_select %p28_p9, %s941_s22, %s30_s7  }
  0x24   : > { %p39_p13 = por %p38_p10, %p37_p12  ;;  %p1176_p0 = scmp.eq.s32.totalorder %s1008_s4, 1 }
  0x25   : > { %s199_s16 = sand.u32 1, %s941_s22   ;;  %s715_s17 = sshll.u32 %s945_s23, 7 }
  0x26   : > { %p1062_p3 = por %p1176_p0, %p37_p12  ;;  %s714_s18 = sshll.u32 %s199_s16, 3 }
  0x27   : > { %s1071_s28 = scalar_lea.hbm %s1162_s0, %s715_s17  ;;  %s203_s29 = scalar_lea.vmem [#allocation3], %s714_s18 }
  0x28   : > { %s1177_s15 = scalar_select %p1062_p3, 1, 0 }
  0x29   : > { %s210_s30 = sshll.u32 %s203_s29, 4  ;;  %p1073_p11 = pnand %p777_p2, %p39_p13  ;;  %s211_s30 = int_to_ptr.vmem [resolvable:$true] %s210_s30 }
  0x2a   : > { %s200_s8 = scalar_lea.sflag [#allocation4], %s199_s16  ;;  %s849_s9 = scalar_lea.hbm %s1071_s28, 128 }
  0x2b   : > { %p850_p5 = scmp.ne.s32.totalorder %s1071_s28, %s849_s9  ;;  %p851_p7 = pneg %p1073_p11 }
  0x2c   : > { %s854_s12 = scalar_lea.hbm %s1162_s0, 256  ;;  %p855_p10 = scmp.lt.s32.totalorder %s1071_s28, %s1162_s0 }
  0x2d   : > { %p852_p9 = pnand %p851_p7, %p850_p5  ;;  %p856_p2 = scmp.lt.s32.totalorder %s854_s12, %s849_s9 }
  0x2f   : > { %p853_p12 = pneg %p852_p9  ;;  %p857_p13 = por %p856_p2, %p855_p10 }
  0x31   : > { %p858_p0 = pnand %p857_p13, %p853_p12 }
  0x33   : > { %861 = shalt.err (!%p858_p0)
}
  0x34   : > { %s862_s18 = scalar_lea.vmem %s211_s30, 128  ;;  %s950_s16 = smov [#allocation3]  }
  0x35   : > { %p863_p1 = scmp.ne.s32.totalorder %s211_s30, %s862_s18  ;;  %s867_s19 = sshll.u32 %s950_s16, 4  ;;  %s868_s19 = int_to_ptr.vmem [resolvable:$false] %s867_s19 }
  0x36   : > { %s869_s24 = scalar_lea.vmem %s868_s19, 256  ;;  %p870_p5 = scmp.lt.s32.totalorder %s211_s30, %s868_s19 }
  0x37   : > { %p865_p6 = pnand %p863_p1, %p851_p7  ;;  %p871_p9 = scmp.lt.s32.totalorder %s869_s24, %s862_s18 }
  0x39   : > { %p866_p3 = pneg %p865_p6  ;;  %p872_p4 = por %p871_p9, %p870_p5 }
  0x3b   : > { %p873_p8 = pnand %p872_p4, %p866_p3 }
  0x3d   : > { %876 = shalt.err (!%p873_p8)
}
  0x3e   : > { %771 = dma.hbm_to_vmem [thread:$0]  (!%p1073_p11), %s1071_s28, 128, %s211_s30, %s200_s8  }
  0x3f   : > { %p1179_p12 = scmp.ne.s32.totalorder %s1174_s27, 0 }
  0x40   : > { %s1094_s29 = sand.u32 (!%p1179_p12), 1, %s937_s21   ;;  %p1180_p1 = scmp.ne.s32.totalorder (!%p1179_p12), %s1172_s25, 0 }
  0x41   : > { %219 = sbr.rel (%p1179_p12) target bundleno = 1150 (0x47e), region = 40  ;;  %s717_s9 = sshll.u32 (!%p1179_p12), %s1094_s29, 3 }
  0x42   : > { %s222_s10 = scalar_lea.sflag (!%p1179_p12), [#allocation4], %s1094_s29  ;;  %s225_s11 = scalar_lea.vmem (!%p1179_p12), [#allocation3], %s717_s9 }
  0x46   : > { %920 = dma.done.wait (%p1180_p1), %s222_s10, 128  }
  0x47   : > { %922 = vsyncadd (%p1180_p1), %s222_s10, 4294967168  ;;  %p1181_p4 = scmp.eq.s32.totalorder %s1008_s4, 0 }
  0x49   : > { %924 = dma.done.wait (%p1181_p4), [#allocation7], 1536   ;;  %p1182_p6 = pmov %p1181_p4 }
  0x4a   : > { %v951_v0 = vmov 0.0   ;;  %v266_v1 = vld [vmem:[#allocation6 + $0x50] sm:$0xff]  ;;  %v265_v2 = vld [vmem:[#allocation6 + $0x48] sm:$0xff]  ;;  %v263_v3 = vld [vmem:[#allocation6 + $0x38] sm:$0xff]  ;;  %vm285_vm0 = vcmask 261120   ;;  %vm952_vm1 = vmmov 0   ;;  %v270_v14 = vlaneseq }
  0x4b   : > { %926 = vsyncadd (%p1182_p6), [#allocation7], 4294965760  ;;  %353 = vmatprep.mubr.f32.mxu0 %v951_v0  ;;  %735 = vmatprep.subr.mxu1 %v951_v0  ;;  %v262_v4 = vld [vmem:[#allocation6 + $0x30] sm:$0xff]  ;;  %v260_v5 = vld [vmem:[#allocation6 + $0x20] sm:$0xff]  ;;  %vm500_vm2 = vcmask 64512   ;;  %s586_s7 = sld [smem:[#allocation2]] }
  0x4c   : > { %313 = vmatprep.subr.mxu0 %v266_v1  ;;  %v259_v6 = vld [vmem:[#allocation6 + $0x18] sm:$0xff]  ;;  %v257_v7 = vld [vmem:[#allocation6 + $0x8] sm:$0xff]  ;;  %v256_v8 = vld [vmem:[#allocation6] sm:$0xff]  ;;  %743 = vmatprep.mubr.msk.f32.mxu1 %vm952_vm1, %v951_v0  ;;  %v1111_v15 = vshrl.u32 %v270_v14, 7  ;;  %v613_v56 = vand.u32 127, %v270_v14  ;;  %s723_s8 = sshll.u32 %s1008_s4, 4 }
  0x4d   : > { %314 = vmatpush1.msra.mxu0 %v265_v2  ;;  %v255_v9 = vld [vmem:[%s225_s11] sm:$0xff]  ;;  %v264_v11 = vld [vmem:[#allocation6 + $0x40] sm:$0xff]  ;;  %v261_v12 = vld [vmem:[#allocation6 + $0x28] sm:$0xff]  ;;  %s254_s12 = scalar_lea.vmem [#allocation8], %s1094_s29  ;;  %vm619_vm3 = vcmask 57344   ;;  %s632_s16 = scalar_lea.hbm %s1167_s5, %s723_s8 }
  0x4e   : > { %315 = vmatprep.subr.mxu0 %v263_v3  ;;  %v267_v10 = vld [vmem:[#allocation6 + $0x58] sm:$0xff]  ;;  %v258_v13 = vld [vmem:[#allocation6 + $0x10] sm:$0xff]  ;;  %v276_v16 = vsub.s32 1, %v1111_v15  ;;  %v272_v18 = vsub.s32 0, %v1111_v15  ;;  %v280_v28 = vsub.s32 2, %v1111_v15  ;;  %v616_v58 = vsub.s32 %v613_v56, %v1111_v15  ;;  %s634_s13 = sshll.u32 %s254_s12, 4  ;;  %s635_s13 = int_to_ptr.vmem [resolvable:$true] %s634_s13 }
  0x4f   : > { %316 = vmatpush1.msra.mxu0 %v262_v4  ;;  %736 = vmatpush3.msra.mxu1 %v267_v10  ;;  %v268_v17 = vld [vmem:[%s1164_s2] sm:$0x7]  ;;  %s622_s19 = scalar_lea.sflag [#allocation5], %s1094_s29  ;;  %s877_s24 = scalar_lea.vmem %s635_s13, 16 }
  0x50   : > { %317 = vmatprep.subr.mxu0 %v260_v5  ;;  %737 = vmatprep.subr.mxu1 %v951_v0  ;;  %v277_v19 = vrot.slane %v268_v17, %v276_v16  ;;  %v273_v21 = vrot.slane %v268_v17, %v272_v18  ;;  %v281_v30 = vrot.slane %v268_v17, %v280_v28  ;;  %v722_v53 = vld [vmem:[%s1165_s3] ss:$0 sm:$0xff]  ;;  %p878_p8 = scmp.ne.s32.totalorder %s635_s13, %s877_s24  ;;  %p1183_p3 = scmp.ne.s32.totalorder %s1177_s15, 0 }
  0x51   : > { %318 = vmatpush1.msra.mxu0 %v259_v6  ;;  %738 = vmatpush3.msra.mxu1 %v264_v11  ;;  %v609_v57 = vstv %s586_s7  ;;  %s953_s9 = smov [#allocation8]  }
  0x52   : > { %319 = vmatprep.subr.mxu0 %v257_v7  ;;  %739 = vmatprep.subr.mxu1 %v951_v0  ;;  %p879_p11 = pnand %p878_p8, %p1183_p3  ;;  %s881_s10 = sshll.u32 %s953_s9, 4  ;;  %s882_s10 = int_to_ptr.vmem [resolvable:$false] %s881_s10 }
  0x53   : > { %320 = vmatpush1.msra.mxu0 %v256_v8  ;;  %740 = vmatpush3.msra.mxu1 %v261_v12  ;;  %s883_s4 = scalar_lea.vmem %s882_s10, 32  ;;  %p884_p10 = scmp.lt.s32.totalorder %s635_s13, %s882_s10 }
  0x54   : > { %719 = vmatmul.mubr.msk.f32.vlgmr.msra.gmra.mxu0 %vm285_vm0, %v255_v9  ;;  %746 = vmatprep.subr.mxu0 %v951_v0  ;;  %p880_p7 = pneg %p879_p11  ;;  %p885_p2 = scmp.lt.s32.totalorder %s883_s4, %s877_s24 }
  0x55   : > { %748 = vmatprep.mubr.msk.f32.mxu0 %vm952_vm1, %v951_v0  ;;  %741 = vmatprep.subr.mxu1 %v951_v0 }
  0x56   : > { %742 = vmatpush3.msra.mxu1 %v258_v13  ;;  %p886_p13 = por %p885_p2, %p884_p10 }
  0x57   : > { %744 = vmatmul.mubr.msk.f32.vlgmr.msra.gmra.mxu1 %vm285_vm0, %v255_v9  ;;  %751 = vmatprep.subr.mxu1 %v951_v0 }
  0x58   : > { %753 = vmatprep.mubr.msk.f32.mxu1 %vm952_vm1, %v951_v0  ;;  %p887_p0 = pnand %p886_p13, %p880_p7 }
 0x114   : > { %v355_v20 = vpop.f32.mrf.mxu0 }
 0x115   : > { %v356_v24 = vadd.f32 %v355_v20, %v273_v21 }
 0x116   : > { %v357_v22 = vpop.f32.mrf.mxu0 }
 0x117   : > { %v358_v23 = vadd.f32 %v357_v22, %v277_v19  ;;  %v426_v29 = vpop.f32.mrf.mxu1 }
 0x118   : > { %v427_v32 = vadd.f32 %v426_v29, %v281_v30 }
 0x119   : > { %747 = vmatpush3.xpose.msra.mxu0 %v358_v23  ;;  %v745_v31 = vpop.f32.mrf.mxu1 }
 0x11a   : > { %752 = vmatpush3.msra.mxu1 %v427_v32 }
 0x11c   : > { %749 = vmatmul.mubr.f32.vlgmr.msra.gmra.mxu0 %v356_v24 }
 0x1dc   : > { %v496_v25 = vpop.f32.mrf.mxu0 }
 0x1dd   : > { %v501_v26 = vsel %vm500_vm2, %v496_v25, -inf }
 0x1de   : > { %502 = vmax.xlane.f32.xlu0 %v501_v26  ;;  %v750_v27 = vpop.f32.mrf.mxu0 }
 0x267   : > { %v503_v33 = vpop.xlane.xlu0 %502 }
 0x268   : > { %v504_v34 = vsub.f32 %v496_v25, %v503_v33 }
 0x26a   : > { %v505_v35 = vmul.f32 1.442695, %v504_v34 }
 0x26c   : > { %817 = vpow2.f32 %v505_v35 }
 0x279   : > { %v818_v36 = vpop.eup %817 }
 0x27a   : > { %754 = vmatmul.mubr.msk.f32.vlgmr.msra.gmra.mxu1 %vm500_vm2, %v818_v36  ;;  %v507_v37 = vsel %vm500_vm2, %v818_v36, 0.0 }
 0x27b   : > { %508 = vadd.xlane.f32.xlu0 %v507_v37 }
 0x304   : > { %v509_v38 = vpop.xlane.xlu0 %508 }
 0x305   : > { %819 = vrcp.f32 %v509_v38 }
 0x312   : > { %v820_v39 = vpop.eup %819 }
 0x33a   : > { %v579_v40 = vpop.f32.mrf.mxu1 }
 0x33b   : > { %v584_v41 = vmul.f32 %v820_v39, %v579_v40 }
 0x33c   : > { %v755_v42 = vpop.f32.mrf.mxu1 }
 0x33d   : > { %587 = vadd.xlane.f32.xlu1 %v584_v41  ;;  %v589_v43 = vmul.f32 %v584_v41, %v584_v41 }
 0x341   : > { %590 = vadd.xlane.f32.xlu1 %v589_v43 }
 0x3c6   : > { %v588_v44 = vpop.xlane.xlu1 %587 }
 0x3c7   : > { %v592_v45 = vmul.f32 0.03125, %v588_v44 }
 0x3c9   : > { %v594_v47 = vmul.f32 %v592_v45, %v592_v45  ;;  %v596_v51 = vsub.f32 %v584_v41, %v592_v45 }
 0x3ca   : > { %v591_v46 = vpop.xlane.xlu1 %590 }
 0x3cb   : > { %v593_v48 = vmul.f32 0.03125, %v591_v46 }
 0x3cd   : > { %v595_v49 = vsub.f32 %v593_v48, %v594_v47 }
 0x3cf   : > { %v597_v50 = vadd.f32 1e-05, %v595_v49 }
 0x3d1   : > { %821 = vrsqrt.f32 %v597_v50 }
 0x3de   : > { %v822_v52 = vpop.eup %821 }
 0x3df   : > { %v599_v54 = vmul.f32 %v822_v52, %v596_v51 }
 0x3e1   : > { %v606_v55 = vmul.f32 %v722_v53, %v599_v54 }
 0x3e3   : > { %607 = vadd.xlane.f32.xlu0 %v606_v55 }
 0x46c   : > { %v608_v59 = vpop.xlane.xlu0 %607 }
 0x46d   : > { %v610_v60 = vadd.f32 %v609_v57, %v608_v59 }
 0x46f   : > { %v617_v61 = vrot.slane %v610_v60, %v616_v58 }
 0x471   : > { %620 = vst.msk [vmem:[%s254_s12] sm:$0x1] %vm619_vm3, %v617_v61 }
 0x472   : > { %890 = shalt.err (!%p887_p0)
}
 0x473   : > { %s891_s11 = scalar_lea.hbm %s632_s16, 16  ;;  %s895_s27 = scalar_lea.hbm %s1167_s5, 32 }
 0x474   : > { %p892_p5 = scmp.ne.s32.totalorder %s632_s16, %s891_s11  ;;  %p896_p1 = scmp.lt.s32.totalorder %s632_s16, %s1167_s5 }
 0x475   : > { %p897_p4 = scmp.lt.s32.totalorder %s895_s27, %s891_s11 }
 0x476   : > { %p893_p9 = pnand %p892_p5, %p1183_p3 }
 0x477   : > { %p898_p6 = por %p897_p4, %p896_p1 }
 0x478   : > { %p894_p12 = pneg %p893_p9 }
 0x47a   : > { %p899_p8 = pnand %p898_p6, %p894_p12 }
 0x47c   : > { %902 = shalt.err (!%p899_p8)
}
 0x47d   : > { %762 = dma.vmem_to_hbm [thread:$0]  (%p1183_p3), %s635_s13, 16, %s632_s16, %s622_s19  }
 0x47e PF: > { %s646_s7 = sand.u32 1, %s933_s20   ;;  %p1184_p11 = scmp.ne.s32.totalorder %s1173_s26, 0 }
 0x47f   : > { %p1185_p7 = scmp.ge.s32.totalorder %s945_s23, 2  ;;  %s647_s8 = scalar_lea.sflag [#allocation5], %s646_s7 }
 0x481   : > { %p773_p10 = pnand %p1185_p7, %p1184_p11 }
 0x483   : > { %p774_p2 = pneg %p773_p10 }
 0x485   : > { %928 = dma.done.wait (%p774_p2), %s647_s8, 16  }
 0x486   : > { %930 = vsyncadd (%p774_p2), %s647_s8, 4294967280  ;;  %p20_p13 = scmp.ge.s32.totalorder %s1041_s6, 4   ;;  %s1186_s20 = smov %s937_s21 }
 0x487   : > { %s1187_s21 = smov %s941_s22  ;;  %s1188_s22 = smov %s1058_s14 }
 0x488   : > { %s1189_s23 = smov %s1041_s6  ;;  %22 = sbr.rel (!%p20_p13) target bundleno = 8 (0x8), region = 89 }
 0x48d   :  { %651 = vsyncpa [#allocation4], 1 }
 0x48e   :  { %653 = vsyncpa [#allocation4 + $0x1], 1 }
 0x48f   :  { %654 = vsyncpa [#allocation7], 1 }
 0x490   :  { %655 = vsyncpa [#allocation5], 1 }
 0x491   :  { %657 = vsyncpa [#allocation5 + $0x1], 1 }

</bundles_post_ra>
